<compile_context>
chip_gen: v5e
topology: v5e:2x2
jax: 0.10.0
libtpu: 0.0.40
codegen_flags: <defaults>
</compile_context>

<pallas_src>
import math

import jax
import jax.numpy as jnp
from jax.experimental import pallas as pl
from jax.experimental.pallas import tpu as pltpu


# ---------------------------------------------------------------------------
# Kernels
# ---------------------------------------------------------------------------

def _pair_kernel(p_ref, x_ref, o_ref):
    # One literal pair per row: x row = [literal | partner]; flip == swap halves.
    x = x_ref[...]
    d = x.shape[-1] // 2
    a = p_ref[0:1, :]                                    # (1, 2D) f32
    b = p_ref[1:2, :]                                    # (1, 2D) f32
    flipped = pltpu.roll(x, shift=d, axis=1)             # out[l] = x[(l - D) % 2D]
    o_ref[...] = jnp.maximum(a * x + b * flipped, 0.0).astype(o_ref.dtype)


def _make_multipair_kernel(shift_fwd, shift_bwd):
    # m > 1 pairs per row.  flipped[l] = x[l+D] on even halves, x[l-D] on odd
    # halves.  Instead of an iota/select, the wrapper zeroes b on the halves a
    # given roll does not serve, so the blend is pure multiply-add:
    #   out = relu(a*x + b_even*roll(x, W-D) + b_odd*roll(x, D))
    def kernel(p_ref, x_ref, o_ref):
        x = x_ref[...]
        a = p_ref[0:1, :]
        b_even = p_ref[1:2, :]
        b_odd = p_ref[2:3, :]
        r_fwd = pltpu.roll(x, shift=shift_fwd, axis=1)    # out[l] = x[(l + D) % W]
        if shift_bwd == shift_fwd:
            r_bwd = r_fwd
        else:
            r_bwd = pltpu.roll(x, shift=shift_bwd, axis=1)  # out[l] = x[(l - D) % W]
        y = a * x + b_even * r_fwd + b_odd * r_bwd
        o_ref[...] = jnp.maximum(y, 0.0).astype(o_ref.dtype)
    return kernel


def _row_kernel(p_ref, x_ref, o_ref):
    # Fallback (no lane-dense packing divides N): (tile_rows, D) blocks.  Tiles
    # are even-sized and start on even rows, so pairs never straddle a block.
    x = x_ref[...]
    tn = x.shape[0]
    a = p_ref[0:1, :]
    b = p_ref[1:2, :]
    up = pltpu.roll(x, shift=tn - 1, axis=0)              # up[i]   = x[(i + 1) % tn]
    down = pltpu.roll(x, shift=1, axis=0)                 # down[i] = x[(i - 1) % tn]
    row = jax.lax.broadcasted_iota(jnp.int32, x.shape, 0)
    flipped = jnp.where(row % 2 == 0, up, down)           # flipped[i] = x[i ^ 1]
    o_ref[...] = jnp.maximum(a * x + b * flipped, 0.0).astype(o_ref.dtype)


# ---------------------------------------------------------------------------
# Wrapper helpers
# ---------------------------------------------------------------------------

def _vmem_capacity_bytes():
    try:
        return int(pltpu.get_tpu_info().vmem_capacity_bytes)
    except Exception:
        return 64 * 1024 * 1024   # conservative default (v7x per-TC VMEM)


def _choose_pairs_per_row(n_rows, d, max_pairs_per_row=4096):
    """Smallest m with (2*m*d) % 128 == 0 and (2*m) | n_rows, else None."""
    pairs_total = n_rows // 2
    step = 64 // math.gcd(64, d)           # m*d % 64 == 0  <=>  2*m*d % 128 == 0
    m = step
    while m <= min(pairs_total, max_pairs_per_row):
        if pairs_total % m == 0:
            return m
        m += step
    return None


def _choose_tile_rows(rows, row_bytes, granule, block_bytes):
    """Tile height: a granule multiple bounded by the per-block VMEM budget and
    capped so the grid has >= 2 steps when the array is tall enough (so the
    parallel axis can shard across both v7x TensorCores).  Returns `rows`
    (single full-array block, always legal) only when splitting is impossible."""
    if rows <= granule:
        return rows
    by_bytes = max(granule, (block_bytes // max(row_bytes, 1)) // granule * granule)
    by_split = max(granule, ((rows // 2) // granule) * granule)
    tile = min(by_bytes, by_split)
    return rows if tile >= rows else tile


# ---------------------------------------------------------------------------
# Public entry point
# ---------------------------------------------------------------------------

def literals_message(a, b, literals):
    N, D = literals.shape
    assert N % 2 == 0, "number of literals must be even"
    assert a.shape == (D,) and b.shape == (D,)

    dtype = literals.dtype
    itemsize = jnp.dtype(dtype).itemsize
    granule = max(8, 32 // itemsize)       # sublane granule: 8 f32, 16 bf16, 32 int8

    vmem_cap = _vmem_capacity_bytes()
    # in + out, double-buffered => ~4 live blocks; target ~half of VMEM.
    block_bytes = min(16 * 1024 * 1024, max(1 * 1024 * 1024, vmem_cap // 8))

    a32 = jnp.asarray(a, jnp.float32)      # keep params f32 (compute promoted to f32)
    b32 = jnp.asarray(b, jnp.float32)

    m = _choose_pairs_per_row(N, D)
    if m is not None:
        rows, width = N // (2 * m), 2 * m * D
        x = literals.reshape(rows, width)              # free contiguous reshape
        if m == 1:
            params = jnp.stack([jnp.tile(a32, 2), jnp.tile(b32, 2)])        # (2, W)
            kernel = _pair_kernel
        else:
            zeros = jnp.zeros_like(b32)
            params = jnp.stack([
                jnp.tile(a32, 2 * m),                                        # a on all halves
                jnp.tile(jnp.concatenate([b32, zeros]), m),                  # b on even halves
                jnp.tile(jnp.concatenate([zeros, b32]), m),                  # b on odd halves
            ])                                                               # (3, W)
            kernel = _make_multipair_kernel(width - D, D)
    else:
        # Rare fallback: masked stores, but correct for any even N / any D.
        rows, width = N, D
        x = literals
        params = jnp.stack([a32, b32])                                       # (2, D)
        kernel = _row_kernel

    tile_rows = _choose_tile_rows(rows, width * itemsize, granule, block_bytes)
    grid = (pl.cdiv(rows, tile_rows),)

    tile_bytes = tile_rows * width * itemsize
    params_bytes = 2 * 8 * width * 4       # double-buffered, sublane-padded f32
    vmem_limit = max(16 * 1024 * 1024, 4 * tile_bytes + params_bytes + (4 << 20))
    vmem_limit = min(vmem_limit, vmem_cap * 3 // 4)     # never request ~all of VMEM (v7x)

    out = pl.pallas_call(
        kernel,
        out_shape=jax.ShapeDtypeStruct((rows, width), dtype),
        grid_spec=pltpu.PrefetchScalarGridSpec(
            num_scalar_prefetch=0,
            grid=grid,
            in_specs=[
                # Constant index_map -> fetched once, never re-DMA'd per step.
                pl.BlockSpec(params.shape, lambda i: (0, 0)),
                pl.BlockSpec((tile_rows, width), lambda i: (i, 0)),
            ],
            out_specs=pl.BlockSpec((tile_rows, width), lambda i: (i, 0)),
        ),
        compiler_params=pltpu.CompilerParams(
            dimension_semantics=("parallel",),
            vmem_limit_bytes=int(vmem_limit),
        ),
    )(params, x)

    return out.reshape(N, D) if m is not None else out


# ---------------------------------------------------------------------------
# Reference + self-test
# ---------------------------------------------------------------------------

def _reference(a, b, x):
    n, d = x.shape
    xf = x.astype(jnp.float32)
    flipped = xf.reshape(n // 2, 2, d)[:, ::-1, :].reshape(n, d)
    out = jnp.maximum(a.astype(jnp.float32)[None, :] * xf
                      + b.astype(jnp.float32)[None, :] * flipped, 0.0)
    return out.astype(x.dtype)


if __name__ == "__main__":
    root = jax.random.PRNGKey(0)

    def run_case(key, n, d, dtype, atol, rtol):
        ka, kb, kx = jax.random.split(key, 3)
        a = jax.random.normal(ka, (d,), dtype=jnp.float32)
        b = jax.random.normal(kb, (d,), dtype=jnp.float32)
        x = jax.random.normal(kx, (n, d), dtype=jnp.float32).astype(dtype)
        out = jax.block_until_ready(literals_message(a, b, x))
        exp = _reference(a, b, x)
        assert out.shape == (n, d) and out.dtype == dtype
        assert jnp.allclose(out.astype(jnp.float32), exp.astype(jnp.float32),
                            atol=atol, rtol=rtol), (n, d, str(dtype))

    keys = jax.random.split(root, 5)
    # 1) Module demo size: D=32 -> m=2 packing, rows of width 128, single block.
    run_case(keys[0], 16, 32, jnp.float32, 1e-5, 1e-5)
    # 2) D multiple of 128 -> one pair per row, single lane roll, grid of 2.
    run_case(keys[1], 64, 128, jnp.float32, 1e-5, 1e-5)
    # 3) Ragged grid (rows not a multiple of the tile) on the packed path.
    run_case(keys[2], 80, 32, jnp.float32, 1e-5, 1e-5)
    # 4) Awkward D with no lane-dense packing -> row-kernel fallback, grid of 2.
    run_case(keys[3], 48, 20, jnp.float32, 1e-5, 1e-5)
    # 5) bf16 streaming (params stay f32; compute promoted, only the store casts).
    run_case(keys[4], 64, 128, jnp.bfloat16, 5e-2, 5e-2)

    print("KERNEL_OK")
</pallas_src>

<mosaic_0001>
module attributes {stable_mosaic.version = 11 : i64} {
  func.func @kernel(%arg0: i32, %arg1: memref<3x128xf32, #tpu.memory_space<vmem>>, %arg2: memref<4x128xf32, #tpu.memory_space<vmem>>, %arg3: memref<4x128xf32, #tpu.memory_space<vmem>>) attributes {dimension_semantics = [#tpu.dimension_semantics<parallel>], iteration_bounds = array<i64: 1>, scalar_prefetch = 0 : i64, scratch_operands = 0 : i64, tpu.core_type = #tpu.core_type<tc>, window_params = [{pipeline_mode = #tpu.pipeline_mode<synchronous>, transform_indices = @transform_0, window_bounds = array<i64: 3, 128>}, {transform_indices = @transform_1, window_bounds = array<i64: 4, 128>}, {transform_indices = @transform_2, window_bounds = array<i64: 4, 128>}]} {
    %c0 = arith.constant 0 : index
    %c0_0 = arith.constant 0 : index
    %0 = vector.load %arg2[%c0, %c0_0] : memref<4x128xf32, #tpu.memory_space<vmem>>, vector<4x128xf32>
    %c0_1 = arith.constant 0 : index
    %c0_2 = arith.constant 0 : index
    %1 = vector.load %arg1[%c0_1, %c0_2] : memref<3x128xf32, #tpu.memory_space<vmem>>, vector<1x128xf32>
    %c1 = arith.constant 1 : index
    %c0_3 = arith.constant 0 : index
    %2 = vector.load %arg1[%c1, %c0_3] : memref<3x128xf32, #tpu.memory_space<vmem>>, vector<1x128xf32>
    %c2 = arith.constant 2 : index
    %c0_4 = arith.constant 0 : index
    %3 = vector.load %arg1[%c2, %c0_4] : memref<3x128xf32, #tpu.memory_space<vmem>>, vector<1x128xf32>
    %c96_i32 = arith.constant 96 : i32
    %4 = tpu.dynamic_rotate %0 by %c96_i32 dim 1 : vector<4x128xf32>, i32 -> vector<4x128xf32>
    %c32_i32 = arith.constant 32 : i32
    %5 = tpu.dynamic_rotate %0 by %c32_i32 dim 1 : vector<4x128xf32>, i32 -> vector<4x128xf32>
    %6 = vector.broadcast %1 : vector<1x128xf32> to vector<4x128xf32>
    %7 = arith.mulf %6, %0 : vector<4x128xf32>
    %8 = vector.broadcast %2 : vector<1x128xf32> to vector<4x128xf32>
    %9 = arith.mulf %8, %4 : vector<4x128xf32>
    %10 = arith.addf %7, %9 : vector<4x128xf32>
    %11 = vector.broadcast %3 : vector<1x128xf32> to vector<4x128xf32>
    %12 = arith.mulf %11, %5 : vector<4x128xf32>
    %13 = arith.addf %10, %12 : vector<4x128xf32>
    %cst = arith.constant 0.000000e+00 : f32
    %14 = vector.broadcast %cst : f32 to vector<4x128xf32>
    %15 = arith.maximumf %13, %14 : vector<4x128xf32>
    %c0_5 = arith.constant 0 : index
    %c0_6 = arith.constant 0 : index
    %16 = vector.load %arg3[%c0_5, %c0_6] : memref<4x128xf32, #tpu.memory_space<vmem>>, vector<4x128xf32>
    tpu.vector_store %arg3[%c0_5, %c0_6], %15 {strides = array<i32>} : memref<4x128xf32, #tpu.memory_space<vmem>>, vector<4x128xf32>,
    return
  }
  func.func @transform_0(%arg0: i32) -> (i32, i32) {
    %c0_i32 = arith.constant 0 : i32
    %c0_i32_0 = arith.constant 0 : i32
    %c0_i32_1 = arith.constant 0 : i32
    return %c0_i32, %c0_i32_0 : i32, i32
  }
  func.func @transform_1(%arg0: i32) -> (i32, i32) {
    %c0_i32 = arith.constant 0 : i32
    %c0_i32_0 = arith.constant 0 : i32
    return %arg0, %c0_i32 : i32, i32
  }
  func.func @transform_2(%arg0: i32) -> (i32, i32) {
    %c0_i32 = arith.constant 0 : i32
    %c0_i32_0 = arith.constant 0 : i32
    return %arg0, %c0_i32 : i32, i32
  }
}

</mosaic_0001>

<bundles_post_ra>
// kernel: tpu_custom_call.1
= control target key start
LH: loop header
LB: loop body
LE: loop exit
PB: predicated region body
PF: predicated region fallthrough
CT: control target
= control target key end

     0   :  { %7 = vsyncpa [#allocation3], 0  ;;  %s191_s0 = inlined_call_operand.hbm [shape: f32[3,128], index: 0, kind: input, shape index: {}]   ;;  %s192_s1 = inlined_call_operand.hbm [shape: f32[4,128], index: 1, kind: input, shape index: {}]   ;;  %s193_s2 = inlined_call_operand.hbm [shape: f32[4,128], index: 2, kind: output, shape index: {}]  }
   0x1   :  { %8 = vsyncpa [#allocation6], 0 }
   0x2   :  { %9 = vsyncpa [#allocation4], 0  ;;  %s15_s11 = sshll.u32 %s191_s0, 4  ;;  %s162_s12 = smov [#allocation2]   ;;  %s16_s11 = int_to_ptr.hbm [resolvable:$true] %s15_s11 }
   0x3   :  { %s17_s13 = sshll.u32 %s162_s12, 4  ;;  %s26_s16 = sshll.u32 %s192_s1, 4  ;;  %s18_s13 = int_to_ptr.vmem [resolvable:$true] %s17_s13  ;;  %s27_s16 = int_to_ptr.hbm [resolvable:$true] %s26_s16 }
   0x4   :  { %20 = dma.hbm_to_vmem [thread:$0]  %s16_s11, 64, %s18_s13, [#allocation3]  }
   0x5   :  { %s163_s17 = smov [#allocation5]  }
   0x6   :  { %s28_s18 = sshll.u32 %s163_s17, 4  ;;  %s29_s18 = int_to_ptr.vmem [resolvable:$true] %s28_s18 }
   0x7   :  { %31 = dma.hbm_to_vmem [thread:$0]  %s27_s16, 64, %s29_s18, [#allocation6]  }
   0x8   :  { %156 = dma.done.wait [#allocation3], 64  }
   0x9   :  { %157 = vsyncadd [#allocation3], 4294967232 }
   0xa   :  { %158 = dma.done.wait [#allocation6], 64  }
   0xb   :  { %159 = vsyncadd [#allocation6], 4294967232  ;;  %v40_v0 = vld [vmem:[#allocation5] sm:$0xf]  ;;  %s164_s0 = smov 96   ;;  %s165_s19 = smov 32  }
   0xc   :  { %44 = vrot.lane.b32.xlu0 %v40_v0, %s164_s0  ;;  %v81_v2 = vld [vmem:[#allocation2] ss:$0 sm:$0xff]  ;;  %v82_v3 = vld [vmem:[#allocation2 + $0x1] ss:$0 sm:$0xff]  ;;  %v83_v6 = vld [vmem:[#allocation2 + $0x2] ss:$0 sm:$0xff] }
   0xd   :  { %v49_v4 = vmul.f32 %v81_v2, %v40_v0  ;;  %s166_s1 = smov [#allocation7]   ;;  %s65_s23 = sshll.u32 %s193_s2, 4  ;;  %s66_s23 = int_to_ptr.hbm [resolvable:$true] %s65_s23 }
   0xe   :  { %s63_s20 = sshll.u32 %s166_s1, 4  ;;  %s64_s20 = int_to_ptr.vmem [resolvable:$true] %s63_s20 }
  0x14   :  { %46 = vrot.lane.b32.xlu0 %v40_v0, %s165_s19 }
  0x7e   :  { %v45_v1 = vpop.permute.xlu0 %44 }
  0x7f   :  { %v51_v5 = vmul.f32 %v82_v3, %v45_v1 }
  0x81   :  { %v52_v8 = vadd.f32 %v51_v5, %v49_v4 }
  0x86   :  { %v47_v7 = vpop.permute.xlu0 %46 }
  0x87   :  { %v54_v9 = vmul.f32 %v83_v6, %v47_v7 }
  0x89   :  { %v55_v10 = vadd.f32 %v54_v9, %v52_v8 }
  0x8b   :  { %v56_v11 = vmax.f32 %v55_v10, 0.0 }
  0x8d   :  { %57 = vst [vmem:[#allocation7] sm:$0xf] %v56_v11 }
  0x8e   :  { %68 = dma.vmem_to_hbm [thread:$0]  %s64_s20, 64, %s66_s23, [#allocation4]  }
  0x8f   :  { %160 = dma.done.wait [#allocation4], 64  }
  0x90   :  { %161 = vsyncadd [#allocation4], 4294967232 }
  0x91   :  { %73 = vsyncpa [#allocation3], 1 }
  0x92   :  { %74 = vsyncpa [#allocation6], 1 }
  0x93   :  { %75 = vsyncpa [#allocation4], 1 }

</bundles_post_ra>
